<compile_context>
chip_gen: v5e
topology: v5e:2x2
jax: 0.10.0
libtpu: 0.0.40
codegen_flags: <defaults>
</compile_context>

<pallas_src>
import functools

import jax
import jax.numpy as jnp
from jax.experimental import pallas as pl
from jax.experimental.pallas import tpu as pltpu


# ----------------------------- shared math (kernel AND reference) ------------

def _layernorm(x, g, b, eps=1e-12):
    mu = jnp.mean(x, axis=-1, keepdims=True)
    var = jnp.mean((x - mu) ** 2, axis=-1, keepdims=True)
    return (x - mu) * jax.lax.rsqrt(var + eps) * g + b


def _backbone_math(x, neg_mask,
                   wq, bq, wk, bk, wv, bv, wo, bo, ln1g, ln1b,
                   wf1, bf1, wf2, bf2, ln2g, ln2b, wp, bp):
    """Reference: full-sequence synthetic 1-layer encoder + BERT pooler."""
    B, S, H = x.shape
    xf = x.reshape(B * S, H)

    q = (jnp.dot(xf, wq) + bq).reshape(B, S, H)
    k = (jnp.dot(xf, wk) + bk).reshape(B, S, H)
    v = (jnp.dot(xf, wv) + bv).reshape(B, S, H)

    s = jnp.einsum('bqh,bkh->bqk', q, k) / jnp.sqrt(jnp.float32(H))
    s = s + neg_mask
    s = s - jnp.max(s, axis=-1, keepdims=True)
    p = jnp.exp(s)
    p = p / jnp.sum(p, axis=-1, keepdims=True)

    ctx = jnp.einsum('bqk,bkh->bqh', p, v).reshape(B * S, H)
    attn = jnp.dot(ctx, wo) + bo
    h1 = _layernorm(xf + attn, ln1g, ln1b)

    ff = jax.nn.gelu(jnp.dot(h1, wf1) + bf1)
    ff = jnp.dot(ff, wf2) + bf2
    h2 = _layernorm(h1 + ff, ln2g, ln2b)

    cls = h2.reshape(B, S, H)[:, 0, :]            # (B, H) CLS token
    pooled = jnp.tanh(jnp.dot(cls, wp) + bp)      # BERT pooler
    return pooled


def _head_math(pooled, wfc, bfc, w1, b1, w2a, w2b, b2, w3a, w3b, w3c, b3):
    """Reference HiBERT head (split-weight form of the concatenated Linears)."""
    proj = jnp.dot(jnp.tanh(pooled), wfc) + bfc        # fc_layer (FCLayer)
    tproj = jnp.tanh(proj)

    logit1 = jnp.dot(tproj, w1) + b1                   # classifier_1
    t1 = jnp.tanh(logit1)

    logit2 = jnp.dot(t1, w2a) + jnp.dot(tproj, w2b) + b2   # classifier_2
    t2 = jnp.tanh(logit2)

    logit3 = jnp.dot(t1, w3a) + jnp.dot(t2, w3b) + jnp.dot(tproj, w3c) + b3
    return logit1, logit2, logit3


# ----------------------------- fused Pallas kernel ----------------------------

def hibert_kernel(x_ref, mask_ref, wq_ref, wk_ref, wv_ref, wo_ref,
                  wf1_ref, wf2_ref, wp_ref, vec_ref, bf1_ref,
                  wfc_ref, bfc_ref, wt_ref, bslab_ref,
                  w2a_ref, w3a_ref, w3b_ref, out_ref,
                  *, dims, compute_dtype):
    B, S, H, C1, C2, C3 = dims
    f32 = jnp.float32

    def mm(a, b):
        # MXU matmul: operands in compute_dtype (bf16 on v6e/v7x), f32 accumulation.
        return jnp.dot(a.astype(compute_dtype), b.astype(compute_dtype),
                       preferred_element_type=f32)

    x = x_ref[...]                                   # (B, S, H) f32 embeddings
    xf = x.reshape(B * S, H)

    # packed (1, H) bias / LayerNorm rows (one VMEM tile instead of ten tiny refs)
    vec = vec_ref[...]                               # (10, H)
    bq, bk, bv, bo = vec[0:1], vec[1:2], vec[2:3], vec[3:4]
    ln1g, ln1b = vec[4:5], vec[5:6]
    bf2 = vec[6:7]
    ln2g, ln2b = vec[7:8], vec[8:9]
    bp = vec[9:10]

    # --- attention: K/V over all tokens, Q for the CLS row only (exact) --------
    k = (mm(xf, wk_ref[...]) + bk).reshape(B, S, H)
    v = (mm(xf, wv_ref[...]) + bv).reshape(B, S, H)

    cls = x[:, 0, :]                                 # (B, H) CLS embedding
    q = (mm(cls, wq_ref[...]) + bq)[:, None, :]      # (B, 1, H)

    scale = 1.0 / float(H) ** 0.5
    s = jnp.einsum('bqh,bkh->bqk',
                   q.astype(compute_dtype), k.astype(compute_dtype),
                   preferred_element_type=f32) * scale
    s = s + mask_ref[...]                            # (B, 1, S) additive mask
    s = s - jnp.max(s, axis=-1, keepdims=True)
    p = jnp.exp(s)
    p = p * pl.reciprocal(jnp.sum(p, axis=-1, keepdims=True), approx=True)

    ctx = jnp.einsum('bqk,bkh->bqh',
                     p.astype(compute_dtype), v.astype(compute_dtype),
                     preferred_element_type=f32)[:, 0, :]      # (B, H)

    attn = mm(ctx, wo_ref[...]) + bo
    h1 = _layernorm(cls + attn, ln1g, ln1b)

    ff = jax.nn.gelu(mm(h1, wf1_ref[...]) + bf1_ref[...])
    ff = mm(ff, wf2_ref[...]) + bf2
    h2 = _layernorm(h1 + ff, ln2g, ln2b)

    pooled = jnp.tanh(mm(h2, wp_ref[...]) + bp)      # BERT pooler, (B, H)

    # --- HiBERT head (FCLayer: dropout[eval] = identity -> tanh -> Linear) -----
    proj = mm(jnp.tanh(pooled), wfc_ref[...]) + bfc_ref[...]
    tproj = jnp.tanh(proj)

    # One stacked MXU pass for all tproj-facing weights; the result is already
    # the lane-dense (B, SLAB) slab base (padding columns of wt/bslab are zero).
    base = mm(tproj, wt_ref[...]) + bslab_ref[...]   # (B, SLAB)

    l1 = base[:, :C1]
    t1 = jnp.tanh(l1)
    l2 = base[:, C1:C1 + C2] + mm(t1, w2a_ref[...])
    t2 = jnp.tanh(l2)
    l3 = base[:, C1 + C2:C1 + C2 + C3] + mm(t1, w3a_ref[...]) + mm(t2, w3b_ref[...])

    slab = out_ref.shape[-1]
    pad = jnp.zeros((B, slab - (C1 + C2 + C3)), f32)
    out_ref[...] = jnp.concatenate([l1, l2, l3, pad], axis=-1)   # full-lane store


# ----------------------------- wrapper -----------------------------------------

_VMEM = pl.BlockSpec(memory_space=pltpu.MemorySpace.VMEM)


def run_hibert(x, neg_mask, bb_params, head_params, dims,
               compute_dtype=jnp.float32, slab=128):
    """Single fused pallas_call: backbone pooler + HiBERT head -> 3 logit tensors."""
    B, S, H, C1, C2, C3 = dims
    assert C1 + C2 + C3 <= slab

    (wq, bq, wk, bk, wv, bv, wo, bo, ln1g, ln1b,
     wf1, bf1, wf2, bf2, ln2g, ln2b, wp, bp) = bb_params
    (wfc, bfc, w1, b1, w2a, w2b, b2, w3a, w3b, w3c, b3) = head_params
    FF = wf1.shape[1]

    # pack the ten (1, H) vectors into one array (fewer tiny padded VMEM refs)
    vecs = jnp.concatenate(
        [bq, bk, bv, bo, ln1g, ln1b, bf2, ln2g, ln2b, bp], axis=0)   # (10, H)

    # stack the tproj-facing classifier weights/biases into one lane-dense slab
    ncls = C1 + C2 + C3
    wt = jnp.concatenate([w1, w2b, w3c], axis=1)                     # (2H, ncls)
    wt_pad = jnp.zeros((wt.shape[0], slab), jnp.float32).at[:, :ncls].set(wt)
    b_slab = jnp.zeros((1, slab), jnp.float32).at[:, :ncls].set(
        jnp.concatenate([b1, b2, b3], axis=1))

    args = (x, neg_mask, wq, wk, wv, wo, wf1, wf2, wp, vecs, bf1,
            wfc, bfc, wt_pad, b_slab, w2a, w3a, w3b)

    kernel = functools.partial(hibert_kernel, dims=dims, compute_dtype=compute_dtype)

    flops = 2 * (B * S * H * H * 2      # K, V projections
                 + B * H * H            # Q (CLS row only)
                 + B * S * H * 2        # scores + context
                 + B * H * H            # attention output projection
                 + B * H * FF * 2       # FFN
                 + B * H * H            # pooler
                 + B * H * (2 * H)      # fc_layer
                 + B * (2 * H) * slab   # stacked classifiers
                 + B * (C1 * C2 + C1 * C3 + C2 * C3))
    transcendentals = B * (S + FF + 6 * H + 3 * slab)
    bytes_accessed = 4 * (sum(int(a.size) for a in args) + B * slab)

    out = pl.pallas_call(
        kernel,
        out_shape=jax.ShapeDtypeStruct((B, slab), jnp.float32),
        in_specs=[_VMEM] * len(args),
        out_specs=_VMEM,
        cost_estimate=pl.CostEstimate(flops=flops,
                                      transcendentals=transcendentals,
                                      bytes_accessed=bytes_accessed),
    )(*args)

    return out[:, :C1], out[:, C1:C1 + C2], out[:, C1 + C2:C1 + C2 + C3]


# ----------------------------- driver -------------------------------------------

if __name__ == "__main__":
    # Small, module-consistent sizes.
    B, S, H, FF = 2, 8, 32, 128
    V = 50
    C1, C2, C3 = 4, 6, 8            # digit_1_class, digit_2_class, digit_3_class

    keys = iter(jax.random.split(jax.random.PRNGKey(0), 64))

    def w(shape, scale=0.1):
        return (scale * jax.random.normal(next(keys), shape)).astype(jnp.float32)

    # --- inputs (input_ids, attention_mask) -----------------------------------
    input_ids = jax.random.randint(next(keys), (B, S), 0, V)
    attention_mask = jnp.array([[1, 1, 1, 1, 1, 1, 1, 1],
                                [1, 1, 1, 1, 1, 1, 0, 0]], dtype=jnp.float32)

    # --- synthetic backbone parameters ----------------------------------------
    word_emb = w((V, H))
    pos_emb = w((S, H))
    bb_params = (
        w((H, H)), w((1, H)),      # wq, bq
        w((H, H)), w((1, H)),      # wk, bk
        w((H, H)), w((1, H)),      # wv, bv
        w((H, H)), w((1, H)),      # wo, bo
        jnp.ones((1, H), jnp.float32), jnp.zeros((1, H), jnp.float32),   # ln1
        w((H, FF)), w((1, FF)),    # wf1, bf1
        w((FF, H)), w((1, H)),     # wf2, bf2
        jnp.ones((1, H), jnp.float32), jnp.zeros((1, H), jnp.float32),   # ln2
        w((H, H)), w((1, H)),      # pooler
    )

    # --- HiBERT head parameters (PyTorch Linear weights, stored transposed) ---
    wfc = w((H, 2 * H));                     bfc = w((1, 2 * H))
    w1_full = w((2 * H, C1));                b1 = w((1, C1))
    w2_full = w((C1 + 2 * H, C2));           b2 = w((1, C2))
    w3_full = w((C1 + C2 + 2 * H, C3));      b3 = w((1, C3))
    # Split concatenated-input weights along their input rows (exact math).
    w2a, w2b = w2_full[:C1], w2_full[C1:]
    w3a, w3b, w3c = w3_full[:C1], w3_full[C1:C1 + C2], w3_full[C1 + C2:]
    head_params = (wfc, bfc, w1_full, b1, w2a, w2b, b2, w3a, w3b, w3c, b3)

    # --- glue: embeddings and additive attention mask -------------------------
    x = (word_emb[input_ids] + pos_emb[None, :, :]).astype(jnp.float32)   # (B,S,H)
    neg_mask = ((1.0 - attention_mask) * -1e9)[:, None, :]                # (B,1,S)

    dims = (B, S, H, C1, C2, C3)

    # --- fused Pallas kernel, f32 MXU operands ---------------------------------
    logit_1, logit_2, logit_3 = run_hibert(x, neg_mask, bb_params, head_params, dims)
    jax.block_until_ready((logit_1, logit_2, logit_3))

    # --- pure-JAX reference (full-sequence backbone; verifies the CLS-only path)
    ref_pooled = _backbone_math(x, neg_mask, *bb_params)
    ref_l1, ref_l2, ref_l3 = _head_math(ref_pooled, *head_params)

    assert logit_1.shape == (B, C1) and logit_2.shape == (B, C2) and logit_3.shape == (B, C3)
    for got, ref in ((logit_1, ref_l1), (logit_2, ref_l2), (logit_3, ref_l3)):
        assert jnp.allclose(got, ref, atol=1e-2, rtol=5e-2), (
            f"f32 mismatch: max abs err {jnp.max(jnp.abs(got - ref))}")

    # --- bf16 MXU-operand variant (v6e/v7x MXU path), f32 accumulation ----------
    bl1, bl2, bl3 = run_hibert(x, neg_mask, bb_params, head_params, dims,
                               compute_dtype=jnp.bfloat16)
    jax.block_until_ready((bl1, bl2, bl3))
    for got, ref in ((bl1, ref_l1), (bl2, ref_l2), (bl3, ref_l3)):
        assert jnp.allclose(got, ref, atol=1e-1, rtol=1e-1), (
            f"bf16 mismatch: max abs err {jnp.max(jnp.abs(got - ref))}")

    print("KERNEL_OK")
</pallas_src>

<mosaic_0001>
module attributes {stable_mosaic.version = 11 : i64} {
  func.func @hibert_kernel(%arg0: memref<2x8x32xf32, #tpu.memory_space<vmem>>, %arg1: memref<2x1x8xf32, #tpu.memory_space<vmem>>, %arg2: memref<32x32xf32, #tpu.memory_space<vmem>>, %arg3: memref<32x32xf32, #tpu.memory_space<vmem>>, %arg4: memref<32x32xf32, #tpu.memory_space<vmem>>, %arg5: memref<32x32xf32, #tpu.memory_space<vmem>>, %arg6: memref<32x128xf32, #tpu.memory_space<vmem>>, %arg7: memref<128x32xf32, #tpu.memory_space<vmem>>, %arg8: memref<32x32xf32, #tpu.memory_space<vmem>>, %arg9: memref<10x32xf32, #tpu.memory_space<vmem>>, %arg10: memref<1x128xf32, #tpu.memory_space<vmem>>, %arg11: memref<32x64xf32, #tpu.memory_space<vmem>>, %arg12: memref<1x64xf32, #tpu.memory_space<vmem>>, %arg13: memref<64x128xf32, #tpu.memory_space<vmem>>, %arg14: memref<1x128xf32, #tpu.memory_space<vmem>>, %arg15: memref<4x6xf32, #tpu.memory_space<vmem>>, %arg16: memref<4x8xf32, #tpu.memory_space<vmem>>, %arg17: memref<6x8xf32, #tpu.memory_space<vmem>>, %arg18: memref<2x128xf32, #tpu.memory_space<vmem>>) attributes {dimension_semantics = [], scalar_prefetch = 0 : i64, scratch_operands = 0 : i64, tpu.core_type = #tpu.core_type<tc>} {
    %c0 = arith.constant 0 : index
    %c0_0 = arith.constant 0 : index
    %c0_1 = arith.constant 0 : index
    %0 = vector.load %arg0[%c0, %c0_0, %c0_1] : memref<2x8x32xf32, #tpu.memory_space<vmem>>, vector<2x8x32xf32>
    %1 = vector.shape_cast %0 : vector<2x8x32xf32> to vector<16x32xf32>
    %c0_2 = arith.constant 0 : index
    %c0_3 = arith.constant 0 : index
    %2 = vector.load %arg9[%c0_2, %c0_3] : memref<10x32xf32, #tpu.memory_space<vmem>>, vector<10x32xf32>
    %3 = vector.extract_strided_slice %2 {offsets = [0, 0], sizes = [1, 32], strides = [1, 1]} : vector<10x32xf32> to vector<1x32xf32>
    %4 = vector.extract_strided_slice %2 {offsets = [1, 0], sizes = [1, 32], strides = [1, 1]} : vector<10x32xf32> to vector<1x32xf32>
    %5 = vector.extract_strided_slice %2 {offsets = [2, 0], sizes = [1, 32], strides = [1, 1]} : vector<10x32xf32> to vector<1x32xf32>
    %6 = vector.extract_strided_slice %2 {offsets = [3, 0], sizes = [1, 32], strides = [1, 1]} : vector<10x32xf32> to vector<1x32xf32>
    %7 = vector.extract_strided_slice %2 {offsets = [4, 0], sizes = [1, 32], strides = [1, 1]} : vector<10x32xf32> to vector<1x32xf32>
    %8 = vector.extract_strided_slice %2 {offsets = [5, 0], sizes = [1, 32], strides = [1, 1]} : vector<10x32xf32> to vector<1x32xf32>
    %9 = vector.extract_strided_slice %2 {offsets = [6, 0], sizes = [1, 32], strides = [1, 1]} : vector<10x32xf32> to vector<1x32xf32>
    %10 = vector.extract_strided_slice %2 {offsets = [7, 0], sizes = [1, 32], strides = [1, 1]} : vector<10x32xf32> to vector<1x32xf32>
    %11 = vector.extract_strided_slice %2 {offsets = [8, 0], sizes = [1, 32], strides = [1, 1]} : vector<10x32xf32> to vector<1x32xf32>
    %12 = vector.extract_strided_slice %2 {offsets = [9, 0], sizes = [1, 32], strides = [1, 1]} : vector<10x32xf32> to vector<1x32xf32>
    %c0_4 = arith.constant 0 : index
    %c0_5 = arith.constant 0 : index
    %13 = vector.load %arg3[%c0_4, %c0_5] : memref<32x32xf32, #tpu.memory_space<vmem>>, vector<32x32xf32>
    %cst = arith.constant dense<0.000000e+00> : vector<16x32xf32>
    %14 = tpu.matmul %1, %13, %cst {dimension_numbers = #tpu.dot_dimension_numbers<[1], [0], [0], [1], [0, 0, 1, 1], [], []>} : vector<16x32xf32>, vector<32x32xf32>, vector<16x32xf32> -> vector<16x32xf32>
    %15 = vector.broadcast %4 : vector<1x32xf32> to vector<16x32xf32>
    %16 = arith.addf %14, %15 : vector<16x32xf32>
    %17 = vector.shape_cast %16 : vector<16x32xf32> to vector<2x8x32xf32>
    %c0_6 = arith.constant 0 : index
    %c0_7 = arith.constant 0 : index
    %18 = vector.load %arg4[%c0_6, %c0_7] : memref<32x32xf32, #tpu.memory_space<vmem>>, vector<32x32xf32>
    %cst_8 = arith.constant dense<0.000000e+00> : vector<16x32xf32>
    %19 = tpu.matmul %1, %18, %cst_8 {dimension_numbers = #tpu.dot_dimension_numbers<[1], [0], [0], [1], [0, 0, 1, 1], [], []>} : vector<16x32xf32>, vector<32x32xf32>, vector<16x32xf32> -> vector<16x32xf32>
    %20 = vector.broadcast %5 : vector<1x32xf32> to vector<16x32xf32>
    %21 = arith.addf %19, %20 : vector<16x32xf32>
    %22 = vector.shape_cast %21 : vector<16x32xf32> to vector<2x8x32xf32>
    %23 = vector.extract_strided_slice %0 {offsets = [0, 0, 0], sizes = [2, 1, 32], strides = [1, 1, 1]} : vector<2x8x32xf32> to vector<2x1x32xf32>
    %24 = vector.shape_cast %23 : vector<2x1x32xf32> to vector<2x32xf32>
    %c0_9 = arith.constant 0 : index
    %c0_10 = arith.constant 0 : index
    %25 = vector.load %arg2[%c0_9, %c0_10] : memref<32x32xf32, #tpu.memory_space<vmem>>, vector<32x32xf32>
    %cst_11 = arith.constant dense<0.000000e+00> : vector<2x32xf32>
    %26 = tpu.matmul %24, %25, %cst_11 {dimension_numbers = #tpu.dot_dimension_numbers<[1], [0], [0], [1], [0, 0, 1, 1], [], []>} : vector<2x32xf32>, vector<32x32xf32>, vector<2x32xf32> -> vector<2x32xf32>
    %27 = vector.broadcast %3 : vector<1x32xf32> to vector<2x32xf32>
    %28 = arith.addf %26, %27 : vector<2x32xf32>
    %29 = vector.shape_cast %28 : vector<2x32xf32> to vector<2x1x32xf32>
    "tpu.trace_start"() <{level = 10 : i32, message = "bqh,bkh->bqk"}> : () -> ()
    %cst_12 = arith.constant dense<0.000000e+00> : vector<2x1x8xf32>
    %30 = tpu.matmul %29, %17, %cst_12 {dimension_numbers = #tpu.dot_dimension_numbers<[2], [2], [1], [1], [0, 0, 0, 1, 1, 1], [0], [0]>} : vector<2x1x32xf32>, vector<2x8x32xf32>, vector<2x1x8xf32> -> vector<2x1x8xf32>
    "tpu.trace_stop"() : () -> ()
    %cst_13 = arith.constant 0.176776692 : f32
    %31 = vector.broadcast %cst_13 : f32 to vector<2x1x8xf32>
    %32 = arith.mulf %30, %31 : vector<2x1x8xf32>
    %c0_14 = arith.constant 0 : index
    %c0_15 = arith.constant 0 : index
    %c0_16 = arith.constant 0 : index
    %33 = vector.load %arg1[%c0_14, %c0_15, %c0_16] : memref<2x1x8xf32, #tpu.memory_space<vmem>>, vector<2x1x8xf32>
    %34 = arith.addf %32, %33 : vector<2x1x8xf32>
    %cst_17 = arith.constant dense<0xFF800000> : vector<2x1xf32>
    %35 = vector.multi_reduction <maximumf>, %34, %cst_17 [2] : vector<2x1x8xf32> to vector<2x1xf32>
    %36 = vector.shape_cast %35 : vector<2x1xf32> to vector<2x1x1xf32>
    %37 = vector.broadcast %36 : vector<2x1x1xf32> to vector<2x1x8xf32>
    %38 = arith.subf %34, %37 : vector<2x1x8xf32>
    %39 = math.exp %38 : vector<2x1x8xf32>
    %cst_18 = arith.constant dense<0.000000e+00> : vector<2x1xf32>
    %40 = vector.multi_reduction <add>, %39, %cst_18 [2] : vector<2x1x8xf32> to vector<2x1xf32>
    %41 = vector.shape_cast %40 : vector<2x1xf32> to vector<2x1x1xf32>
    %42 = tpu.reciprocal %41 {approx = true} : vector<2x1x1xf32> -> vector<2x1x1xf32>
    %43 = vector.broadcast %42 : vector<2x1x1xf32> to vector<2x1x8xf32>
    %44 = arith.mulf %39, %43 : vector<2x1x8xf32>
    "tpu.trace_start"() <{level = 10 : i32, message = "bqk,bkh->bqh"}> : () -> ()
    %cst_19 = arith.constant dense<0.000000e+00> : vector<2x1x32xf32>
    %45 = tpu.matmul %44, %22, %cst_19 {dimension_numbers = #tpu.dot_dimension_numbers<[2], [1], [1], [2], [0, 0, 0, 1, 1, 2], [0], [0]>} : vector<2x1x8xf32>, vector<2x8x32xf32>, vector<2x1x32xf32> -> vector<2x1x32xf32>
    "tpu.trace_stop"() : () -> ()
    %46 = vector.shape_cast %45 : vector<2x1x32xf32> to vector<2x32xf32>
    %c0_20 = arith.constant 0 : index
    %c0_21 = arith.constant 0 : index
    %47 = vector.load %arg5[%c0_20, %c0_21] : memref<32x32xf32, #tpu.memory_space<vmem>>, vector<32x32xf32>
    %cst_22 = arith.constant dense<0.000000e+00> : vector<2x32xf32>
    %48 = tpu.matmul %46, %47, %cst_22 {dimension_numbers = #tpu.dot_dimension_numbers<[1], [0], [0], [1], [0, 0, 1, 1], [], []>} : vector<2x32xf32>, vector<32x32xf32>, vector<2x32xf32> -> vector<2x32xf32>
    %49 = vector.broadcast %6 : vector<1x32xf32> to vector<2x32xf32>
    %50 = arith.addf %48, %49 : vector<2x32xf32>
    %51 = arith.addf %24, %50 : vector<2x32xf32>
    %cst_23 = arith.constant dense<0.000000e+00> : vector<2xf32>
    %52 = vector.multi_reduction <add>, %51, %cst_23 [1] : vector<2x32xf32> to vector<2xf32>
    %53 = vector.shape_cast %52 : vector<2xf32> to vector<2x1xf32>
    %cst_24 = arith.constant 3.200000e+01 : f32
    %54 = vector.broadcast %cst_24 : f32 to vector<2x1xf32>
    %55 = arith.divf %53, %54 : vector<2x1xf32>
    %56 = vector.broadcast %55 : vector<2x1xf32> to vector<2x32xf32>
    %57 = arith.subf %51, %56 : vector<2x32xf32>
    %58 = arith.mulf %57, %57 : vector<2x32xf32>
    %cst_25 = arith.constant dense<0.000000e+00> : vector<2xf32>
    %59 = vector.multi_reduction <add>, %58, %cst_25 [1] : vector<2x32xf32> to vector<2xf32>
    %60 = vector.shape_cast %59 : vector<2xf32> to vector<2x1xf32>
    %cst_26 = arith.constant 3.200000e+01 : f32
    %61 = vector.broadcast %cst_26 : f32 to vector<2x1xf32>
    %62 = arith.divf %60, %61 : vector<2x1xf32>
    %63 = vector.broadcast %55 : vector<2x1xf32> to vector<2x32xf32>
    %64 = arith.subf %51, %63 : vector<2x32xf32>
    %cst_27 = arith.constant 9.99999996E-13 : f32
    %65 = vector.broadcast %cst_27 : f32 to vector<2x1xf32>
    %66 = arith.addf %62, %65 : vector<2x1xf32>
    %67 = math.rsqrt %66 : vector<2x1xf32>
    %68 = vector.broadcast %67 : vector<2x1xf32> to vector<2x32xf32>
    %69 = arith.mulf %64, %68 : vector<2x32xf32>
    %70 = vector.broadcast %7 : vector<1x32xf32> to vector<2x32xf32>
    %71 = arith.mulf %69, %70 : vector<2x32xf32>
    %72 = vector.broadcast %8 : vector<1x32xf32> to vector<2x32xf32>
    %73 = arith.addf %71, %72 : vector<2x32xf32>
    %c0_28 = arith.constant 0 : index
    %c0_29 = arith.constant 0 : index
    %74 = vector.load %arg6[%c0_28, %c0_29] : memref<32x128xf32, #tpu.memory_space<vmem>>, vector<32x128xf32>
    %cst_30 = arith.constant dense<0.000000e+00> : vector<2x128xf32>
    %75 = tpu.matmul %73, %74, %cst_30 {dimension_numbers = #tpu.dot_dimension_numbers<[1], [0], [0], [1], [0, 0, 1, 1], [], []>} : vector<2x32xf32>, vector<32x128xf32>, vector<2x128xf32> -> vector<2x128xf32>
    %c0_31 = arith.constant 0 : index
    %c0_32 = arith.constant 0 : index
    %76 = vector.load %arg10[%c0_31, %c0_32] : memref<1x128xf32, #tpu.memory_space<vmem>>, vector<1x128xf32>
    %77 = vector.broadcast %76 : vector<1x128xf32> to vector<2x128xf32>
    %78 = arith.addf %75, %77 : vector<2x128xf32>
    %79 = arith.mulf %78, %78 : vector<2x128xf32>
    %80 = arith.mulf %78, %79 : vector<2x128xf32>
    %cst_33 = arith.constant 4.471500e-02 : f32
    %81 = vector.broadcast %cst_33 : f32 to vector<2x128xf32>
    %82 = arith.mulf %81, %80 : vector<2x128xf32>
    %83 = arith.addf %78, %82 : vector<2x128xf32>
    %cst_34 = arith.constant 0.797884583 : f32
    %84 = vector.broadcast %cst_34 : f32 to vector<2x128xf32>
    %85 = arith.mulf %84, %83 : vector<2x128xf32>
    %86 = math.tanh %85 : vector<2x128xf32>
    %cst_35 = arith.constant 1.000000e+00 : f32
    %87 = vector.broadcast %cst_35 : f32 to vector<2x128xf32>
    %88 = arith.addf %87, %86 : vector<2x128xf32>
    %cst_36 = arith.constant 5.000000e-01 : f32
    %89 = vector.broadcast %cst_36 : f32 to vector<2x128xf32>
    %90 = arith.mulf %89, %88 : vector<2x128xf32>
    %91 = arith.mulf %78, %90 : vector<2x128xf32>
    %c0_37 = arith.constant 0 : index
    %c0_38 = arith.constant 0 : index
    %92 = vector.load %arg7[%c0_37, %c0_38] : memref<128x32xf32, #tpu.memory_space<vmem>>, vector<128x32xf32>
    %cst_39 = arith.constant dense<0.000000e+00> : vector<2x32xf32>
    %93 = tpu.matmul %91, %92, %cst_39 {dimension_numbers = #tpu.dot_dimension_numbers<[1], [0], [0], [1], [0, 0, 1, 1], [], []>} : vector<2x128xf32>, vector<128x32xf32>, vector<2x32xf32> -> vector<2x32xf32>
    %94 = vector.broadcast %9 : vector<1x32xf32> to vector<2x32xf32>
    %95 = arith.addf %93, %94 : vector<2x32xf32>
    %96 = arith.addf %73, %95 : vector<2x32xf32>
    %cst_40 = arith.constant dense<0.000000e+00> : vector<2xf32>
    %97 = vector.multi_reduction <add>, %96, %cst_40 [1] : vector<2x32xf32> to vector<2xf32>
    %98 = vector.shape_cast %97 : vector<2xf32> to vector<2x1xf32>
    %cst_41 = arith.constant 3.200000e+01 : f32
    %99 = vector.broadcast %cst_41 : f32 to vector<2x1xf32>
    %100 = arith.divf %98, %99 : vector<2x1xf32>
    %101 = vector.broadcast %100 : vector<2x1xf32> to vector<2x32xf32>
    %102 = arith.subf %96, %101 : vector<2x32xf32>
    %103 = arith.mulf %102, %102 : vector<2x32xf32>
    %cst_42 = arith.constant dense<0.000000e+00> : vector<2xf32>
    %104 = vector.multi_reduction <add>, %103, %cst_42 [1] : vector<2x32xf32> to vector<2xf32>
    %105 = vector.shape_cast %104 : vector<2xf32> to vector<2x1xf32>
    %cst_43 = arith.constant 3.200000e+01 : f32
    %106 = vector.broadcast %cst_43 : f32 to vector<2x1xf32>
    %107 = arith.divf %105, %106 : vector<2x1xf32>
    %108 = vector.broadcast %100 : vector<2x1xf32> to vector<2x32xf32>
    %109 = arith.subf %96, %108 : vector<2x32xf32>
    %cst_44 = arith.constant 9.99999996E-13 : f32
    %110 = vector.broadcast %cst_44 : f32 to vector<2x1xf32>
    %111 = arith.addf %107, %110 : vector<2x1xf32>
    %112 = math.rsqrt %111 : vector<2x1xf32>
    %113 = vector.broadcast %112 : vector<2x1xf32> to vector<2x32xf32>
    %114 = arith.mulf %109, %113 : vector<2x32xf32>
    %115 = vector.broadcast %10 : vector<1x32xf32> to vector<2x32xf32>
    %116 = arith.mulf %114, %115 : vector<2x32xf32>
    %117 = vector.broadcast %11 : vector<1x32xf32> to vector<2x32xf32>
    %118 = arith.addf %116, %117 : vector<2x32xf32>
    %c0_45 = arith.constant 0 : index
    %c0_46 = arith.constant 0 : index
    %119 = vector.load %arg8[%c0_45, %c0_46] : memref<32x32xf32, #tpu.memory_space<vmem>>, vector<32x32xf32>
    %cst_47 = arith.constant dense<0.000000e+00> : vector<2x32xf32>
    %120 = tpu.matmul %118, %119, %cst_47 {dimension_numbers = #tpu.dot_dimension_numbers<[1], [0], [0], [1], [0, 0, 1, 1], [], []>} : vector<2x32xf32>, vector<32x32xf32>, vector<2x32xf32> -> vector<2x32xf32>
    %121 = vector.broadcast %12 : vector<1x32xf32> to vector<2x32xf32>
    %122 = arith.addf %120, %121 : vector<2x32xf32>
    %123 = math.tanh %122 : vector<2x32xf32>
    %124 = math.tanh %123 : vector<2x32xf32>
    %c0_48 = arith.constant 0 : index
    %c0_49 = arith.constant 0 : index
    %125 = vector.load %arg11[%c0_48, %c0_49] : memref<32x64xf32, #tpu.memory_space<vmem>>, vector<32x64xf32>
    %cst_50 = arith.constant dense<0.000000e+00> : vector<2x64xf32>
    %126 = tpu.matmul %124, %125, %cst_50 {dimension_numbers = #tpu.dot_dimension_numbers<[1], [0], [0], [1], [0, 0, 1, 1], [], []>} : vector<2x32xf32>, vector<32x64xf32>, vector<2x64xf32> -> vector<2x64xf32>
    %c0_51 = arith.constant 0 : index
    %c0_52 = arith.constant 0 : index
    %127 = vector.load %arg12[%c0_51, %c0_52] : memref<1x64xf32, #tpu.memory_space<vmem>>, vector<1x64xf32>
    %128 = vector.broadcast %127 : vector<1x64xf32> to vector<2x64xf32>
    %129 = arith.addf %126, %128 : vector<2x64xf32>
    %130 = math.tanh %129 : vector<2x64xf32>
    %c0_53 = arith.constant 0 : index
    %c0_54 = arith.constant 0 : index
    %131 = vector.load %arg13[%c0_53, %c0_54] : memref<64x128xf32, #tpu.memory_space<vmem>>, vector<64x128xf32>
    %cst_55 = arith.constant dense<0.000000e+00> : vector<2x128xf32>
    %132 = tpu.matmul %130, %131, %cst_55 {dimension_numbers = #tpu.dot_dimension_numbers<[1], [0], [0], [1], [0, 0, 1, 1], [], []>} : vector<2x64xf32>, vector<64x128xf32>, vector<2x128xf32> -> vector<2x128xf32>
    %c0_56 = arith.constant 0 : index
    %c0_57 = arith.constant 0 : index
    %133 = vector.load %arg14[%c0_56, %c0_57] : memref<1x128xf32, #tpu.memory_space<vmem>>, vector<1x128xf32>
    %134 = vector.broadcast %133 : vector<1x128xf32> to vector<2x128xf32>
    %135 = arith.addf %132, %134 : vector<2x128xf32>
    %136 = vector.extract_strided_slice %135 {offsets = [0, 0], sizes = [2, 4], strides = [1, 1]} : vector<2x128xf32> to vector<2x4xf32>
    %137 = math.tanh %136 : vector<2x4xf32>
    %138 = vector.extract_strided_slice %135 {offsets = [0, 4], sizes = [2, 6], strides = [1, 1]} : vector<2x128xf32> to vector<2x6xf32>
    %c0_58 = arith.constant 0 : index
    %c0_59 = arith.constant 0 : index
    %139 = vector.load %arg15[%c0_58, %c0_59] : memref<4x6xf32, #tpu.memory_space<vmem>>, vector<4x6xf32>
    %cst_60 = arith.constant dense<0.000000e+00> : vector<2x6xf32>
    %140 = tpu.matmul %137, %139, %cst_60 {dimension_numbers = #tpu.dot_dimension_numbers<[1], [0], [0], [1], [0, 0, 1, 1], [], []>} : vector<2x4xf32>, vector<4x6xf32>, vector<2x6xf32> -> vector<2x6xf32>
    %141 = arith.addf %138, %140 : vector<2x6xf32>
    %142 = math.tanh %141 : vector<2x6xf32>
    %143 = vector.extract_strided_slice %135 {offsets = [0, 10], sizes = [2, 8], strides = [1, 1]} : vector<2x128xf32> to vector<2x8xf32>
    %c0_61 = arith.constant 0 : index
    %c0_62 = arith.constant 0 : index
    %144 = vector.load %arg16[%c0_61, %c0_62] : memref<4x8xf32, #tpu.memory_space<vmem>>, vector<4x8xf32>
    %cst_63 = arith.constant dense<0.000000e+00> : vector<2x8xf32>
    %145 = tpu.matmul %137, %144, %cst_63 {dimension_numbers = #tpu.dot_dimension_numbers<[1], [0], [0], [1], [0, 0, 1, 1], [], []>} : vector<2x4xf32>, vector<4x8xf32>, vector<2x8xf32> -> vector<2x8xf32>
    %146 = arith.addf %143, %145 : vector<2x8xf32>
    %c0_64 = arith.constant 0 : index
    %c0_65 = arith.constant 0 : index
    %147 = vector.load %arg17[%c0_64, %c0_65] : memref<6x8xf32, #tpu.memory_space<vmem>>, vector<6x8xf32>
    %cst_66 = arith.constant dense<0.000000e+00> : vector<2x8xf32>
    %148 = tpu.matmul %142, %147, %cst_66 {dimension_numbers = #tpu.dot_dimension_numbers<[1], [0], [0], [1], [0, 0, 1, 1], [], []>} : vector<2x6xf32>, vector<6x8xf32>, vector<2x8xf32> -> vector<2x8xf32>
    %149 = arith.addf %146, %148 : vector<2x8xf32>
    %cst_67 = arith.constant 0.000000e+00 : f32
    %150 = vector.broadcast %cst_67 : f32 to vector<2x110xf32>
    %151 = tpu.concatenate %136, %141, %149, %150 in 1 : vector<2x4xf32>, vector<2x6xf32>, vector<2x8xf32>, vector<2x110xf32> -> vector<2x128xf32>
    %c0_68 = arith.constant 0 : index
    %c0_69 = arith.constant 0 : index
    %152 = vector.load %arg18[%c0_68, %c0_69] : memref<2x128xf32, #tpu.memory_space<vmem>>, vector<2x128xf32>
    tpu.vector_store %arg18[%c0_68, %c0_69], %151 {strides = array<i32>} : memref<2x128xf32, #tpu.memory_space<vmem>>, vector<2x128xf32>,
    return
  }
}

</mosaic_0001>

<bundles_post_ra>
// kernel: tpu_custom_call.1
= control target key start
LH: loop header
LB: loop body
LE: loop exit
PB: predicated region body
PF: predicated region fallthrough
CT: control target
= control target key end

     0   :  { %s1584_s0 = inlined_call_operand.hbm [shape: f32[2,8,32], index: 0, kind: input, shape index: {}]   ;;  %s1585_s1 = inlined_call_operand.hbm [shape: f32[2,1,8], index: 1, kind: input, shape index: {}]   ;;  %s1586_s2 = inlined_call_operand.vmem [shape: f32[32,32], index: 2, kind: input, shape index: {}]   ;;  %s1587_s3 = inlined_call_operand.vmem [shape: f32[32,32], index: 3, kind: input, shape index: {}]   ;;  %s1588_s4 = inlined_call_operand.vmem [shape: f32[32,32], index: 4, kind: input, shape index: {}]   ;;  %s1589_s5 = inlined_call_operand.hbm [shape: f32[32,32], index: 5, kind: input, shape index: {}]   ;;  %s1590_s6 = inlined_call_operand.hbm [shape: f32[32,128], index: 6, kind: input, shape index: {}]   ;;  %s1591_s7 = inlined_call_operand.vmem [shape: f32[128,32], index: 7, kind: input, shape index: {}]   ;;  %s1592_s8 = inlined_call_operand.hbm [shape: f32[32,32], index: 8, kind: input, shape index: {}]   ;;  %s1593_s9 = inlined_call_operand.hbm [shape: f32[10,32], index: 9, kind: input, shape index: {}]   ;;  %s1594_s10 = inlined_call_operand.vmem [shape: f32[1,128], index: 10, kind: input, shape index: {}]   ;;  %s1595_s11 = inlined_call_operand.hbm [shape: f32[32,64], index: 11, kind: input, shape index: {}]   ;;  %s1596_s12 = inlined_call_operand.hbm [shape: f32[1,64], index: 12, kind: input, shape index: {}]   ;;  %s1597_s13 = inlined_call_operand.vmem [shape: f32[64,128], index: 13, kind: input, shape index: {}]   ;;  %s1598_s14 = inlined_call_operand.hbm [shape: f32[1,128], index: 14, kind: input, shape index: {}]   ;;  %s1599_s15 = inlined_call_operand.vmem [shape: f32[4,6], index: 15, kind: input, shape index: {}]   ;;  %s1600_s16 = inlined_call_operand.hbm [shape: f32[4,8], index: 16, kind: input, shape index: {}]   ;;  %s1601_s17 = inlined_call_operand.vmem [shape: f32[6,8], index: 17, kind: input, shape index: {}]   ;;  %s1602_s18 = inlined_call_operand.hbm [shape: f32[2,128], index: 18, kind: output, shape index: {}]  }
   0x1   :  { %1604 = sst [smem:[#allocation27_spill]] %s1584_s0 }
   0x2   :  { %1605 = sst [smem:[#allocation28_spill]] %s1585_s1 }
   0x3   :  { %1606 = sst [smem:[#allocation29_spill]] %s1586_s2 }
   0x4   :  { %23 = vsyncpa [#allocation3], 0 }
   0x5   :  { %24 = vsyncpa [#allocation6], 0 }
   0x6   :  { %25 = vsyncpa [#allocation9], 0 }
   0x7   :  { %26 = vsyncpa [#allocation12], 0 }
   0x8   :  { %27 = vsyncpa [#allocation15], 0 }
   0x9   :  { %28 = vsyncpa [#allocation18], 0  ;;  %s1607_s29 = sld [smem:[#allocation28_spill]] }
   0xf   :  { %s47_s30 = sshll.u32 %s1607_s29, 4  ;;  %s48_s30 = int_to_ptr.hbm [resolvable:$true] %s47_s30 }
  0x10   :  { %29 = vsyncpa [#allocation4], 0  ;;  %s1242_s0 = smov [#allocation5]   ;;  %s1243_s1 = smov 16  }
  0x11   :  { %s49_s19 = sshll.u32 %s1242_s0, 4  ;;  %s1244_s20 = smov 1   ;;  %s50_s19 = int_to_ptr.vmem [resolvable:$true] %s49_s19 }
  0x12   :  { %55 = dma.hbm_to_vmem [thread:$0]  %s48_s30, 32, %s50_s19, [#allocation6], %s1243_s1, %s1243_s1, %s1244_s20  }
  0x13   :  { %s79_s2 = sshll.u32 %s1590_s6, 4  ;;  %s1245_s23 = smov [#allocation8]   ;;  %s80_s2 = int_to_ptr.hbm [resolvable:$true] %s79_s2 }
  0x14   :  { %s81_s24 = sshll.u32 %s1245_s23, 4  ;;  %s107_s27 = sshll.u32 %s1593_s9, 4  ;;  %s82_s24 = int_to_ptr.vmem [resolvable:$true] %s81_s24  ;;  %s108_s27 = int_to_ptr.hbm [resolvable:$true] %s107_s27 }
  0x15   :  { %s1246_s28 = smov 128   ;;  %s1247_s29 = smov 8  }
  0x16   :  { %87 = dma.hbm_to_vmem [thread:$0]  %s80_s2, 512, %s82_s24, [#allocation9], %s1246_s28, %s1246_s28, %s1247_s29  }
  0x17   :  { %s136_s19 = sshll.u32 %s1596_s12, 4  ;;  %s1248_s6 = smov [#allocation11]   ;;  %s137_s19 = int_to_ptr.hbm [resolvable:$true] %s136_s19 }
  0x18   :  { %s109_s1 = sshll.u32 %s1248_s6, 4  ;;  %s1249_s9 = smov [#allocation14]   ;;  %s110_s1 = int_to_ptr.vmem [resolvable:$true] %s109_s1 }
  0x19   :  { %115 = dma.hbm_to_vmem [thread:$0]  %s108_s27, 256, %s110_s1, [#allocation12], %s1246_s28, %s1246_s28, %s1247_s29  }
  0x1a   :  { %s138_s20 = sshll.u32 %s1249_s9, 4  ;;  %s1608_s23 = sld [smem:[#allocation27_spill]]  ;;  %s139_s20 = int_to_ptr.vmem [resolvable:$true] %s138_s20 }
  0x1b   :  { %141 = dma.hbm_to_vmem [thread:$0]  %s137_s19, 16, %s139_s20, [#allocation15]  }
  0x1c   :  { %s66_s12 = sshll.u32 %s1589_s5, 4  ;;  %s1250_s26 = smov [#allocation2]   ;;  %s67_s12 = int_to_ptr.hbm [resolvable:$true] %s66_s12 }
  0x1d   :  { %s36_s30 = sshll.u32 %s1250_s26, 4  ;;  %s1251_s27 = smov [#allocation7]   ;;  %s37_s30 = int_to_ptr.vmem [resolvable:$true] %s36_s30 }
  0x1e   :  { %s68_s0 = sshll.u32 %s1251_s27, 4  ;;  %s94_s9 = sshll.u32 %s1592_s8, 4  ;;  %s69_s0 = int_to_ptr.vmem [resolvable:$true] %s68_s0  ;;  %s95_s9 = int_to_ptr.hbm [resolvable:$true] %s94_s9 }
  0x1f   :  { %74 = dma.hbm_to_vmem [thread:$0]  %s67_s12, 512, %s69_s0, [#allocation6], %s1246_s28, %s1246_s28, %s1247_s29  }
  0x20   :  { %s34_s25 = sshll.u32 %s1608_s23, 4  ;;  %s122_s20 = sshll.u32 %s1595_s11, 4  ;;  %s35_s25 = int_to_ptr.hbm [resolvable:$true] %s34_s25  ;;  %s123_s20 = int_to_ptr.hbm [resolvable:$true] %s122_s20 }
  0x21   :  { %42 = dma.hbm_to_vmem [thread:$0]  %s35_s25, 256, %s37_s30, [#allocation3], %s1246_s28, %s1246_s28, %s1247_s29  }
  0x22   :  { %s1252_s21 = smov [#allocation10]   ;;  %s1253_s23 = smov [#allocation13]  }
  0x23   :  { %s96_s22 = sshll.u32 %s1252_s21, 4  ;;  %s124_s8 = sshll.u32 %s1253_s23, 4  ;;  %s97_s22 = int_to_ptr.vmem [resolvable:$true] %s96_s22  ;;  %s125_s8 = int_to_ptr.vmem [resolvable:$true] %s124_s8 }
  0x24   :  { %102 = dma.hbm_to_vmem [thread:$0]  %s95_s9, 512, %s97_s22, [#allocation9], %s1246_s28, %s1246_s28, %s1247_s29  }
  0x25   :  { %s149_s24 = sshll.u32 %s1598_s14, 4  ;;  %s162_s26 = sshll.u32 %s1600_s16, 4  ;;  %s150_s24 = int_to_ptr.hbm [resolvable:$true] %s149_s24  ;;  %s163_s26 = int_to_ptr.hbm [resolvable:$true] %s162_s26 }
  0x26   :  { %130 = dma.hbm_to_vmem [thread:$0]  %s123_s20, 512, %s125_s8, [#allocation12], %s1246_s28, %s1246_s28, %s1247_s29  }
  0x27   :  { %s1254_s30 = smov [#allocation16]   ;;  %s1255_s0 = smov [#allocation17]  }
  0x28   :  { %s151_s27 = sshll.u32 %s1254_s30, 4  ;;  %s164_s6 = sshll.u32 %s1255_s0, 4  ;;  %s152_s27 = int_to_ptr.vmem [resolvable:$true] %s151_s27  ;;  %s165_s6 = int_to_ptr.vmem [resolvable:$true] %s164_s6 }
  0x29   :  { %154 = dma.hbm_to_vmem [thread:$0]  %s150_s24, 16, %s152_s27, [#allocation15]  }
  0x2a   :  { %167 = dma.hbm_to_vmem [thread:$0]  %s163_s26, 64, %s165_s6, [#allocation18]  }
  0x2b   :  { %1228 = dma.done.wait [#allocation3], 256  }
  0x2c   :  { %1229 = vsyncadd [#allocation3], 4294967040 }
  0x2d   :  { %1230 = dma.done.wait [#allocation6], 544  }
  0x2e   :  { %1231 = vsyncadd [#allocation6], 4294966752 }
  0x2f   :  { %1232 = dma.done.wait [#allocation9], 1024  }
  0x30   :  { %1233 = vsyncadd [#allocation9], 4294966272 }
  0x31   :  { %1234 = dma.done.wait [#allocation12], 768  }
  0x32   :  { %1235 = vsyncadd [#allocation12], 4294966528 }
  0x33   :  { %1236 = dma.done.wait [#allocation15], 32  }
  0x34   :  { %1237 = vsyncadd [#allocation15], 4294967264 }
  0x35   :  { %1238 = dma.done.wait [#allocation18], 64  }
  0x36   :  { %1239 = vsyncadd [#allocation18], 4294967232  ;;  %v217_v0 = vld [vmem:[%s1587_s3 + $0x18] sm:$0xff]  ;;  %s1609_s1 = sld [smem:[#allocation29_spill]]  ;;  %v216_v2 = vld [vmem:[%s1587_s3 + $0x10] sm:$0xff]  ;;  %vm283_vm0 = vcmask 1041409  }
  0x37   :  { %238 = vmatpush.msra.mxu0 %v217_v0  ;;  %v215_v4 = vld [vmem:[%s1587_s3 + $0x8] sm:$0xff]  ;;  %v214_v6 = vld [vmem:[%s1587_s3] sm:$0xff]  ;;  %vm219_vm1 = vcmask 261120   ;;  %v1440_v12 = vld [vmem:[#allocation11] sm:$0xff]  ;;  %vm365_vm2 = vcmask 57344   ;;  %vm388_vm3 = vcmask 64512  }
  0x38   :  { %v1425_v7 = vld [vmem:[#allocation2] sm:$0xff]  ;;  %v1427_v8 = vld [vmem:[#allocation2 + $0x8] sm:$0xff]  ;;  %v218_v13 = vperm.slane %v1440_v12, 1  ;;  %v281_v16 = vperm.slane %v1440_v12, 0  ;;  %v252_v22 = vld [vmem:[%s1588_s4 + $0x18] sm:$0xff]  ;;  %v253_v36 = vperm.slane %v1440_v12, 2 }
  0x39   :  { %239 = vmatpush.msra.mxu0 %v216_v2  ;;  %v282_v10 = vrot.slane %v1427_v8, 7  ;;  %v251_v23 = vld [vmem:[%s1588_s4 + $0x10] sm:$0xff]  ;;  %266 = vmatpush.msra.mxu1 %v252_v22  ;;  %v250_v24 = vld [vmem:[%s1588_s4 + $0x8] sm:$0xff]  ;;  %v249_v25 = vld [vmem:[%s1588_s4] sm:$0xff]  ;;  %vm477_vm4 = vcmask 254976   ;;  %vm741_vm12 = vcmask 523264  }
  0x3a   :  { %v362_v28 = vld [vmem:[#allocation5 + $0x1] sm:$0x1]  ;;  %v361_v33 = vld [vmem:[#allocation5] sm:$0x1]  ;;  %v437_v58 = vld [vmem:[#allocation7 + $0x10] sm:$0xff]  ;;  %vm771_vm13 = vcmask 1043456  }
  0x3b   :  { %240 = vmatpush.msra.mxu0 %v215_v4  ;;  %v284_v11 = vsel %vm283_vm0, %v282_v10, %v1425_v7  ;;  %267 = vmatpush.msra.mxu1 %v251_v23  ;;  %v438_v51 = vld [vmem:[#allocation7 + $0x18] sm:$0xff]  ;;  %v436_v59 = vld [vmem:[#allocation7 + $0x8] sm:$0xff]  ;;  %v435_v60 = vld [vmem:[#allocation7] sm:$0xff]  ;;  %vm767_vm14 = vcmask 31744   ;;  %s1258_s4 = smov 4   ;;  %vm837_vm15 = vcmask 1045504  }
  0x3c   :  { %v280_v1 = vld [vmem:[%s1609_s1 + $0x18] sm:$0xff]  ;;  %v279_v3 = vld [vmem:[%s1609_s1 + $0x10] sm:$0xff]  ;;  %v278_v5 = vld [vmem:[%s1609_s1 + $0x8] sm:$0xff]  ;;  %s1259_s28 = smov 124   ;;  %s1260_s29 = smov [#allocation19]  }
  0x3d   :  { %299 = vmatpush.msra.mxu2 %v280_v1  ;;  %v277_v9 = vld [vmem:[%s1609_s1] sm:$0xff]  ;;  %241 = vmatpush.msra.mxu0 %v214_v6  ;;  %v439_v1 = vperm.slane %v1440_v12, 3  ;;  %s877_s1 = sshll.u32 %s1260_s29, 4  ;;  %s879_s5 = sshll.u32 %s1602_s18, 4  ;;  %s878_s1 = int_to_ptr.vmem [resolvable:$true] %s877_s1  ;;  %s880_s5 = int_to_ptr.hbm [resolvable:$true] %s879_s5 }
  0x3e   :  { %894 = vmatmul.msk.f32.vlgmr.msra.gmra.mxu0 %vm219_vm1, %v1425_v7  ;;  %268 = vmatpush.msra.mxu1 %v250_v24 }
  0x3f   :  { %300 = vmatpush.msra.mxu2 %v279_v3  ;;  %458 = vmatpush.msrb.mxu0 %v438_v51  ;;  %v526_v51 = vperm.slane %v1440_v12, 5 }
  0x40   :  { %269 = vmatpush.msra.mxu1 %v249_v25 }
  0x41   :  { %301 = vmatpush.msra.mxu2 %v278_v5  ;;  %896 = vmatmul.msk.f32.vlgmr.msra.gmra.mxu1 %vm219_vm1, %v1425_v7 }
  0x42   :  { %459 = vmatpush.msrb.mxu0 %v437_v58  ;;  %v582_v58 = vld [vmem:[%s1591_s7 + $0x50] sm:$0xff] }
  0x43   :  { %302 = vmatpush.msra.mxu2 %v277_v9 }
  0x44   :  { %898 = vmatmul.msk.f32.vlgmr.msra.gmra.mxu2 %vm219_vm1, %v284_v11  ;;  %460 = vmatpush.msrb.mxu0 %v436_v59  ;;  %v581_v59 = vld [vmem:[%s1591_s7 + $0x48] sm:$0xff] }
  0x46   :  { %895 = vmatmul.msk.f32.gmra.mxu0 %vm219_vm1, %v1427_v8 }
  0x47   :  { %461 = vmatpush.msrb.mxu0 %v435_v60  ;;  %v580_v60 = vld [vmem:[%s1591_s7 + $0x40] sm:$0xff] }
  0x49   :  { %897 = vmatmul.msk.f32.gmra.mxu1 %vm219_vm1, %v1427_v8 }
  0xbb   :  { %v243_v14 = vpop.f32.mrf.mxu0 }
  0xbc   :  { %v244_v15 = vadd.f32 %v243_v14, %v218_v13 }
  0xbe   :  { %899 = vmatpush.xpose.msk.msra.mxu3 %vm219_vm1, %v244_v15  ;;  %v271_v37 = vpop.f32.mrf.mxu1 }
  0xbf   :  { %v272_v38 = vadd.f32 %v271_v37, %v253_v36  ;;  %v585_v37 = vld [vmem:[%s1591_s7 + $0x68] sm:$0xff] }
  0xc1   :  { %407 = vmatpush.msrb.mxu2 %v272_v38 }
  0xc3   :  { %v246_v19 = vpop.f32.mrf.mxu0 }
  0xc4   :  { %v247_v20 = vadd.f32 %v246_v19, %v218_v13  ;;  %v1256_v13 = vmov 32.0  }
  0xc6   :  { %901 = vmatpush.xpose.msk.msrb.mxu3 %vm219_vm1, %v247_v20  ;;  %v274_v49 = vpop.f32.mrf.mxu1 }
  0xc7   :  { %v304_v17 = vpop.f32.mrf.mxu2  ;;  %v275_v50 = vadd.f32 %v274_v49, %v253_v36 }
  0xc8   :  { %v305_v18 = vadd.f32 %v304_v17, %v281_v16 }
  0xca   :  { %900 = vmatmul.msk.f32.vlgmr.msra.gmra.mxu3 %vm219_vm1, %v305_v18  ;;  %v308_v21 = vrot.slane %v305_v18, 1 }
  0xcb   :  { %430 = vmatpush.msra.mxu3 %v275_v50 }
  0xd2   :  { %902 = vmatmul.msk.f32.vlgmr.msrb.gmra.mxu3 %vm219_vm1, %v308_v21 }
 0x14d   :  { %v331_v26 = vpop.f32.mrf.mxu3 }
 0x14e   :  { %v359_v31 = vmul.f32 0.17677669, %v331_v26 }
 0x150   :  { %v363_v34 = vadd.f32 %v361_v33, %v359_v31  ;;  %v529_v31 = vld [vmem:[#allocation8] sm:$0xff] }
 0x152   :  { %v366_v35 = vsel %vm365_vm2, %v363_v34, -inf }
 0x155   :  { %v356_v27 = vpop.f32.mrf.mxu3 }
 0x156   :  { %v360_v29 = vmul.f32 0.17677669, %v356_v27 }
 0x158   :  { %v364_v30 = vadd.f32 %v362_v28, %v360_v29  ;;  %v532_v28 = vld [vmem:[#allocation8 + $0x18] sm:$0xff]  ;;  %v531_v29 = vld [vmem:[#allocation8 + $0x10] sm:$0xff] }
 0x159   :  { %555 = vmatpush.msrb.mxu1 %v532_v28 }
 0x15a   :  { %v369_v32 = vsel %vm365_vm2, %v364_v30, -inf }
 0x15b   :  { %370 = vmax.xlane.f32.xlu0 %v369_v32  ;;  %556 = vmatpush.msrb.mxu1 %v531_v29 }
 0x163   :  { %367 = vmax.xlane.f32.xlu0 %v366_v35  ;;  %v586_v35 = vld [vmem:[%s1591_s7 + $0x70] sm:$0xff] }
 0x1ce   :  { %v371_v39 = vpop.xlane.xlu0 %370 }
 0x1cf   :  { %v373_v40 = vsub.f32 %v364_v30, %v371_v39  ;;  %v530_v30 = vld [vmem:[#allocation8 + $0x8] sm:$0xff] }
 0x1d0   :  { %557 = vmatpush.msrb.mxu1 %v530_v30 }
 0x1d1   :  { %v376_v41 = vmul.f32 1.442695, %v373_v40 }
 0x1d2   :  { %558 = vmatpush.msrb.mxu1 %v529_v31 }
 0x1d3   :  { %938 = vpow2.f32 %v376_v41 }
 0x1d6   :  { %v368_v42 = vpop.xlane.xlu0 %367 }
 0x1d7   :  { %v372_v43 = vsub.f32 %v363_v34, %v368_v42  ;;  %v587_v34 = vld [vmem:[%s1591_s7 + $0x78] sm:$0xff] }
 0x1d8   :  { %589 = vmatpush.msra.mxu2 %v587_v34 }
 0x1d9   :  { %v939_v44 = vpop.eup %938  ;;  %v374_v45 = vmul.f32 1.442695, %v372_v43 }
 0x1da   :  { %v381_v46 = vsel %vm365_vm2, %v939_v44, 0.0  ;;  %590 = vmatpush.msra.mxu2 %v586_v35 }
 0x1db   :  { %940 = vpow2.f32 %v374_v45  ;;  %382 = vadd.xlane.f32.xlu1 %v381_v46 }
 0x1dc   :  { %591 = vmatpush.msra.mxu2 %v585_v37 }
 0x1e1   :  { %v941_v47 = vpop.eup %940 }
 0x1e2   :  { %v378_v48 = vsel %vm365_vm2, %v941_v47, 0.0  ;;  %vm869_vm2 = vcmask 146432  }
 0x1e3   :  { %379 = vadd.xlane.f32.xlu1 %v378_v48 }
 0x24e   :  { %v383_v52 = vpop.xlane.xlu1 %382 }
 0x24f   :  { %942 = vrcp.f32 %v383_v52 }
 0x255   :  { %v943_v53 = vpop.eup %942 }
 0x256   :  { %v387_v54 = vmul.f32 %v943_v53, %v939_v44  ;;  %v380_v55 = vpop.xlane.xlu1 %379 }
 0x257   :  { %944 = vrcp.f32 %v380_v55 }
 0x258   :  { %904 = vmatmul.msk.f32.vlgmr.msra.gmra.mxu3 %vm388_vm3, %v387_v54  ;;  %946 = vrcp.f32 %v1256_v13 }
 0x25d   :  { %v945_v56 = vpop.eup %944 }
 0x25e   :  { %v386_v57 = vmul.f32 %v945_v56, %v941_v47  ;;  %v947_v14 = vpop.eup %946  ;;  %v523_v47 = vperm.slane %v1440_v12, 4  ;;  %v584_v56 = vld [vmem:[%s1591_s7 + $0x60] sm:$0xff] }
 0x25f   :  { %v482_v15 = vmul.f32 32.0, %v947_v14  ;;  %vm486_vm5 = vweird.f32 %v947_v14  ;;  %592 = vmatpush.msra.mxu2 %v584_v56 }
 0x260   :  { %903 = vmatmul.msk.f32.vlgmr.msrb.gmra.mxu2 %vm388_vm3, %v386_v57  ;;  %v583_v57 = vld [vmem:[%s1591_s7 + $0x58] sm:$0xff] }
 0x261   :  { %v483_v16 = vsub.f32 1.0, %v482_v15  ;;  %593 = vmatpush.msra.mxu2 %v583_v57 }
 0x263   :  { %v484_v17 = vmul.f32 %v947_v14, %v483_v16  ;;  %594 = vmatpush.msra.mxu2 %v582_v58 }
 0x265   :  { %v485_v18 = vadd.f32 %v947_v14, %v484_v17  ;;  %595 = vmatpush.msra.mxu2 %v581_v59 }
 0x267   :  { %v1476_v19 = vsel %vm486_vm5, %v947_v14, %v485_v18  ;;  %596 = vmatpush.msra.mxu2 %v580_v60 }
 0x2db   :  { %v432_v61 = vpop.f32.mrf.mxu3 }
 0x2dc   :  { %v442_v62 = vrot.slane %v432_v61, 7  ;;  %v579_v61 = vld [vmem:[%s1591_s7 + $0x38] sm:$0xff] }
 0x2dd   :  { %597 = vmatpush.msra.mxu2 %v579_v61 }
 0x2e3   :  { %v409_v63 = vpop.f32.mrf.mxu2 }
 0x2e4   :  { %v443_v0 = vsel %vm283_vm0, %v442_v62, %v409_v63  ;;  %v578_v62 = vld [vmem:[%s1591_s7 + $0x30] sm:$0xff]  ;;  %v577_v63 = vld [vmem:[%s1591_s7 + $0x28] sm:$0xff] }
 0x2e5   :  { %905 = vmatmul.msk.f32.vlgmr.msrb.gmra.mxu0 %vm219_vm1, %v443_v0  ;;  %598 = vmatpush.msra.mxu2 %v578_v62  ;;  %v576_v0 = vld [vmem:[%s1591_s7 + $0x20] sm:$0xff] }
 0x2e7   :  { %599 = vmatpush.msra.mxu2 %v577_v63  ;;  %v700_v63 = vld [vmem:[#allocation13 + $0x18] sm:$0xff] }
 0x2e8   :  { %720 = vmatpush.msra.mxu0 %v700_v63 }
 0x2e9   :  { %600 = vmatpush.msra.mxu2 %v576_v0  ;;  %v699_v0 = vld [vmem:[#allocation13 + $0x10] sm:$0xff] }
 0x2ea   :  { %721 = vmatpush.msra.mxu0 %v699_v0 }
 0x362   :  { %v463_v2 = vpop.f32.mrf.mxu0 }
 0x363   :  { %v464_v3 = vadd.f32 %v463_v2, %v439_v1  ;;  %v575_v1 = vld [vmem:[%s1591_s7 + $0x18] sm:$0xff]  ;;  %v574_v2 = vld [vmem:[%s1591_s7 + $0x10] sm:$0xff] }
 0x364   :  { %601 = vmatpush.msra.mxu2 %v575_v1  ;;  %v698_v1 = vld [vmem:[#allocation13 + $0x8] sm:$0xff] }
 0x365   :  { %v467_v4 = vrot.slane %v464_v3, 1  ;;  %v470_v6 = vadd.f32 %v464_v3, %v1425_v7  ;;  %v573_v3 = vld [vmem:[%s1591_s7 + $0x8] sm:$0xff]  ;;  %722 = vmatpush.msra.mxu0 %v698_v1 }
 0x366   :  { %602 = vmatpush.msra.mxu2 %v574_v2  ;;  %v736_v2 = vld [vmem:[%s1597_s13 + $0x38] sm:$0xff] }
 0x367   :  { %v471_v5 = vadd.f32 %v467_v4, %v1427_v8  ;;  %v572_v4 = vld [vmem:[%s1591_s7] sm:$0xff]  ;;  %753 = vmatpush.msra.mxu1 %v736_v2 }
 0x368   :  { %603 = vmatpush.msra.mxu2 %v573_v3  ;;  %v735_v3 = vld [vmem:[%s1597_s13 + $0x30] sm:$0xff] }
 0x369   :  { %v474_v9 = vrot.slane %v471_v5, 7  ;;  %754 = vmatpush.msra.mxu1 %v735_v3 }
 0x36a   :  { %604 = vmatpush.msra.mxu2 %v572_v4  ;;  %v734_v4 = vld [vmem:[%s1597_s13 + $0x28] sm:$0xff] }
 0x36b   :  { %v475_v10 = vsel %vm283_vm0, %v474_v9, %v470_v6  ;;  %755 = vmatpush.msra.mxu1 %v734_v4 }
 0x36c   :  { %v478_v11 = vsel %vm477_vm4, %v475_v10, 0.0 }
 0x36d   :  { %479 = vadd.xlane.f32.xlu2 %v478_v11 }
 0x3e0   :  { %v480_v8 = vpop.xlane.xlu2 %479 }
 0x3e1   :  { %v488_v7 = vmul.f32 %v1476_v19, %v480_v8 }
 0x3e3   :  { %v490_v20 = vrot.slane %v488_v7, 1  ;;  %v493_v21 = vsub.f32 %v470_v6, %v488_v7  ;;  %v588_v7 = vperm.slane %v1440_v12, 6 }
 0x3e5   :  { %v494_v22 = vsub.f32 %v471_v5, %v490_v20  ;;  %v495_v24 = vmul.f32 %v493_v21, %v493_v21  ;;  %v935_v5 = vld [vmem:[%s1594_s10] ss:$0 sm:$0xff] }
 0x3e7   :  { %v496_v23 = vmul.f32 %v494_v22, %v494_v22 }
 0x3e9   :  { %v499_v25 = vrot.slane %v496_v23, 7 }
 0x3eb   :  { %v500_v26 = vsel %vm283_vm0, %v499_v25, %v495_v24 }
 0x3ec   :  { %v502_v27 = vsel %vm477_vm4, %v500_v26, 0.0 }
 0x3ed   :  { %503 = vadd.xlane.f32.xlu2 %v502_v27 }
 0x460   :  { %v504_v32 = vpop.xlane.xlu2 %503 }
 0x461   :  { %v505_v33 = vmul.f32 %v504_v32, %v1476_v19 }
 0x463   :  { %v506_v36 = vadd.f32 1e-12, %v505_v33 }
 0x465   :  { %948 = vrsqrt.f32 %v506_v36  ;;  %vm513_vm7 = vweird.f32 %v506_v36 }
 0x46b   :  { %v949_v38 = vpop.eup %948 }
 0x46c   :  { %v508_v39 = vmul.f32 %v949_v38, %v506_v36  ;;  %vm514_vm6 = vweird.f32 %v949_v38 }
 0x46d   :  { %vm515_vm8 = vmor %vm513_vm7, %vm514_vm6 }
 0x46e   :  { %v509_v40 = vmul.f32 %v949_v38, %v508_v39  ;;  %v666_v39 = vld [vmem:[#allocation10 + $0x10] sm:$0xff] }
 0x470   :  { %v510_v41 = vmul.f32 0.5, %v509_v40  ;;  %v665_v40 = vld [vmem:[#allocation10 + $0x8] sm:$0xff] }
 0x472   :  { %v511_v42 = vsub.f32 1.5, %v510_v41  ;;  %v664_v41 = vld [vmem:[#allocation10] sm:$0xff] }
 0x474   :  { %v512_v43 = vmul.f32 %v949_v38, %v511_v42 }
 0x476   :  { %v516_v44 = vsel %vm515_vm8, %v949_v38, %v512_v43  ;;  %v667_v38 = vld [vmem:[#allocation10 + $0x18] sm:$0xff] }
 0x477   :  { %v518_v45 = vrot.slane %v516_v44, 1  ;;  %v521_v46 = vmul.f32 %v516_v44, %v493_v21  ;;  %687 = vmatpush.msrb.mxu3 %v667_v38 }
 0x479   :  { %v522_v48 = vmul.f32 %v518_v45, %v494_v22  ;;  %v524_v49 = vmul.f32 %v523_v47, %v521_v46  ;;  %688 = vmatpush.msrb.mxu3 %v666_v39 }
 0x47b   :  { %v525_v50 = vmul.f32 %v523_v47, %v522_v48  ;;  %v527_v53 = vadd.f32 %v526_v51, %v524_v49  ;;  %689 = vmatpush.msrb.mxu3 %v665_v40 }
 0x47d   :  { %v528_v52 = vadd.f32 %v526_v51, %v525_v50  ;;  %690 = vmatpush.msrb.mxu3 %v664_v41 }
 0x47f   :  { %v539_v54 = vrot.slane %v528_v52, 7 }
 0x481   :  { %v540_v55 = vsel %vm283_vm0, %v539_v54, %v527_v53 }
 0x482   :  { %906 = vmatmul.msk.f32.vlgmr.msrb.gmra.mxu1 %vm219_vm1, %v540_v55  ;;  %v213_v55 = vld [vmem:[#allocation11 + $0x8] sm:$0x3] }
 0x483   :  { %v661_v58 = vperm.slane %v213_v55, 0 }
 0x4ff   :  { %v560_v6 = vpop.f32.mrf.mxu1 }
 0x500   :  { %v561_v9 = vadd.f32 %v935_v5, %v560_v6  ;;  %v668_v5 = vperm.slane %v213_v55, 1 }
 0x502   :  { %v563_v10 = vmul.f32 %v561_v9, %v561_v9 }
 0x504   :  { %v564_v11 = vmul.f32 %v563_v10, %v561_v9 }
 0x506   :  { %v565_v13 = vmul.f32 0.044715, %v564_v11 }
 0x508   :  { %v566_v14 = vadd.f32 %v565_v13, %v561_v9  ;;  %v733_v13 = vld [vmem:[%s1597_s13 + $0x20] sm:$0xff] }
 0x509   :  { %756 = vmatpush.msra.mxu1 %v733_v13 }
 0x50a   :  { %v567_v15 = vmul.f32 0.7978846, %v566_v14  ;;  %v732_v14 = vld [vmem:[%s1597_s13 + $0x18] sm:$0xff] }
 0x50b   :  { %757 = vmatpush.msra.mxu1 %v732_v14 }
 0x50c   :  { %950 = vtanh.f32 %v567_v15  ;;  %v731_v15 = vld [vmem:[%s1597_s13 + $0x10] sm:$0xff] }
 0x50d   :  { %758 = vmatpush.msra.mxu1 %v731_v15 }
 0x512   :  { %v951_v16 = vpop.eup %950 }
 0x513   :  { %v569_v17 = vadd.f32 1.0, %v951_v16  ;;  %v730_v16 = vld [vmem:[%s1597_s13 + $0x8] sm:$0xff] }
 0x514   :  { %759 = vmatpush.msra.mxu1 %v730_v16 }
 0x515   :  { %v570_v18 = vmul.f32 0.5, %v569_v17  ;;  %v729_v17 = vld [vmem:[%s1597_s13] sm:$0xff]  ;;  %s1257_s13 = smov 10  }
 0x516   :  { %760 = vmatpush.msra.mxu1 %v729_v17 }
 0x517   :  { %v571_v8 = vmul.f32 %v570_v18, %v561_v9  ;;  %v936_v18 = vld [vmem:[#allocation14] ss:$0 sm:$0xff] }
 0x519   :  { %605 = vmatmul.f32.vlgmr.msra.gmra.mxu2 %v571_v8 }
 0x59c   :  { %v606_v20 = vpop.f32.mrf.mxu2 }
 0x59d   :  { %v607_v21 = vadd.f32 %v606_v20, %v588_v7 }
 0x59f   :  { %v610_v22 = vrot.slane %v607_v21, 1  ;;  %v613_v24 = vadd.f32 %v607_v21, %v527_v53  ;;  %v766_v21 = vld [vmem:[%s1599_s15] sm:$0xf] }
 0x5a0   :  { %910 = vmatpush.msk.msra.mxu3 %vm771_vm13, %v766_v21 }
 0x5a1   :  { %v614_v23 = vadd.f32 %v610_v22, %v528_v52  ;;  %v658_v52 = vperm.slane %v1440_v12, 7  ;;  %v697_v12 = vld [vmem:[#allocation13] sm:$0xff] }
 0x5a2   :  { %723 = vmatpush.msra.mxu0 %v697_v12  ;;  %v801_v22 = vld [vmem:[#allocation17] sm:$0xf] }
 0x5a3   :  { %v617_v25 = vrot.slane %v614_v23, 7 }
 0x5a4   :  { %912 = vmatpush.msk.msrb.mxu0 %vm771_vm13, %v801_v22 }
 0x5a5   :  { %v618_v26 = vsel %vm283_vm0, %v617_v25, %v613_v24 }
 0x5a6   :  { %v620_v27 = vsel %vm477_vm4, %v618_v26, 0.0 }
 0x5a7   :  { %621 = vadd.xlane.f32.xlu0 %v620_v27 }
 0x61a   :  { %v622_v28 = vpop.xlane.xlu0 %621 }
 0x61b   :  { %v623_v29 = vmul.f32 %v622_v28, %v1476_v19 }
 0x61d   :  { %v625_v30 = vrot.slane %v623_v29, 1  ;;  %v628_v31 = vsub.f32 %v613_v24, %v623_v29  ;;  %v830_v29 = vld [vmem:[%s1601_s17] sm:$0x3f] }
 0x61f   :  { %v629_v32 = vsub.f32 %v614_v23, %v625_v30  ;;  %v630_v34 = vmul.f32 %v628_v31, %v628_v31  ;;  %v937_v23 = vld [vmem:[#allocation16] ss:$0 sm:$0xff] }
 0x621   :  { %v631_v33 = vmul.f32 %v629_v32, %v629_v32 }
 0x623   :  { %v634_v35 = vrot.slane %v631_v33, 7 }
 0x625   :  { %v635_v36 = vsel %vm283_vm0, %v634_v35, %v630_v34 }
 0x626   :  { %v637_v37 = vsel %vm477_vm4, %v635_v36, 0.0 }
 0x627   :  { %638 = vadd.xlane.f32.xlu1 %v637_v37 }
 0x69a   :  { %v639_v42 = vpop.xlane.xlu1 %638 }
 0x69b   :  { %v640_v43 = vmul.f32 %v639_v42, %v1476_v19 }
 0x69d   :  { %v641_v44 = vadd.f32 1e-12, %v640_v43 }
 0x69f   :  { %952 = vrsqrt.f32 %v641_v44  ;;  %vm648_vm10 = vweird.f32 %v641_v44 }
 0x6a5   :  { %v953_v45 = vpop.eup %952 }
 0x6a6   :  { %v643_v46 = vmul.f32 %v953_v45, %v641_v44  ;;  %vm649_vm9 = vweird.f32 %v953_v45 }
 0x6a7   :  { %vm650_vm11 = vmor %vm648_vm10, %vm649_vm9 }
 0x6a8   :  { %v644_v47 = vmul.f32 %v953_v45, %v643_v46 }
 0x6aa   :  { %v645_v48 = vmul.f32 0.5, %v644_v47 }
 0x6ac   :  { %v646_v49 = vsub.f32 1.5, %v645_v48 }
 0x6ae   :  { %v647_v50 = vmul.f32 %v953_v45, %v646_v49 }
 0x6b0   :  { %v651_v51 = vsel %vm650_vm11, %v953_v45, %v647_v50 }
 0x6b1   :  { %v653_v53 = vrot.slane %v651_v51, 1  ;;  %v656_v54 = vmul.f32 %v651_v51, %v628_v31 }
 0x6b3   :  { %v657_v56 = vmul.f32 %v653_v53, %v629_v32  ;;  %v659_v57 = vmul.f32 %v658_v52, %v656_v54 }
 0x6b5   :  { %v660_v19 = vmul.f32 %v658_v52, %v657_v56  ;;  %v662_v60 = vadd.f32 %v661_v58, %v659_v57 }
 0x6b7   :  { %v663_v59 = vadd.f32 %v661_v58, %v660_v19 }
 0x6b9   :  { %v671_v61 = vrot.slane %v663_v59, 7 }
 0x6bb   :  { %v672_v62 = vsel %vm283_vm0, %v671_v61, %v662_v60  ;;  %vm834_vm0 = vcmask 48128  }
 0x6bc   :  { %907 = vmatmul.msk.f32.vlgmr.msrb.gmra.mxu3 %vm219_vm1, %v672_v62 }
 0x6bd   :  { %914 = vmatpush.msk.msrb.mxu3 %vm837_vm15, %v830_v29 }
 0x73f   :  { %v692_v6 = vpop.f32.mrf.mxu3 }
 0x740   :  { %v693_v9 = vadd.f32 %v692_v6, %v668_v5 }
 0x742   :  { %954 = vtanh.f32 %v693_v9 }
 0x748   :  { %v955_v10 = vpop.eup %954 }
 0x749   :  { %956 = vtanh.f32 %v955_v10 }
 0x74f   :  { %v957_v11 = vpop.eup %956 }
 0x750   :  { %908 = vmatmul.msk.f32.vlgmr.msra.gmra.mxu0 %vm219_vm1, %v957_v11  ;;  %vm867_vm1 = vcmask 80896  }
 0x7cd   :  { %v725_v8 = vpop.f32.mrf.mxu0 }
 0x7ce   :  { %v726_v7 = vadd.f32 %v936_v18, %v725_v8 }
 0x7d0   :  { %958 = vtanh.f32 %v726_v7 }
 0x7d6   :  { %v959_v20 = vpop.eup %958 }
 0x7d7   :  { %909 = vmatmul.msk.f32.vlgmr.msra.gmra.mxu1 %vm741_vm12, %v959_v20 }
 0x854   :  { %v762_v24 = vpop.f32.mrf.mxu1 }
 0x855   :  { %v763_v25 = vadd.f32 %v937_v23, %v762_v24 }
 0x857   :  { %960 = vtanh.f32 %v763_v25 }
 0x85d   :  { %v961_v26 = vpop.eup %960 }
 0x85e   :  { %911 = vmatmul.msk.f32.vlgmr.msra.gmra.mxu3 %vm767_vm14, %v961_v26  ;;  %913 = vmatmul.msk.f32.vlgmr.msrb.gmra.mxu0 %vm767_vm14, %v961_v26 }
 0x8db   :  { %v822_v27 = vpop.f32.mrf.mxu0 }
 0x8dc   :  { %826 = vrot.lane.b32.xlu1 %v822_v27, %s1257_s13 }
 0x8e1   :  { %v792_v28 = vpop.f32.mrf.mxu3 }
 0x8e2   :  { %796 = vrot.lane.b32.xlu2 %v792_v28, %s1258_s4 }
 0x93c   :  { %v797_v30 = vpop.permute.xlu2 %796 }
 0x93d   :  { %v799_v31 = vadd.f32 %v797_v30, %v763_v25 }
 0x93f   :  { %962 = vtanh.f32 %v799_v31  ;;  %v866_v39 = vsel %vm767_vm14, %v763_v25, %v799_v31 }
 0x945   :  { %v963_v32 = vpop.eup %962 }
 0x946   :  { %832 = vrot.lane.b32.xlu0 %v963_v32, %s1259_s28 }
 0x94e   :  { %v827_v35 = vpop.permute.xlu1 %826 }
 0x94f   :  { %v829_v36 = vadd.f32 %v827_v35, %v763_v25 }
 0x9b8   :  { %v833_v33 = vpop.permute.xlu0 %832 }
 0x9b9   :  { %915 = vmatmul.msk.f32.vlgmr.msrb.gmra.mxu3 %vm834_vm0, %v833_v33 }
 0xa3c   :  { %v858_v34 = vpop.f32.mrf.mxu3 }
 0xa3d   :  { %862 = vrot.lane.b32.xlu2 %v858_v34, %s1257_s13 }
 0xa97   :  { %v863_v37 = vpop.permute.xlu2 %862 }
 0xa98   :  { %v865_v38 = vadd.f32 %v863_v37, %v829_v36 }
 0xa9a   :  { %v868_v40 = vsel %vm867_vm1, %v866_v39, %v865_v38 }
 0xa9b   :  { %v870_v41 = vsel %vm869_vm2, %v868_v40, 0.0 }
 0xa9c   :  { %871 = vst [vmem:[#allocation19] sm:$0x3] %v870_v41 }
 0xa9d   :  { %882 = dma.vmem_to_hbm [thread:$0]  %s878_s1, 32, %s880_s5, [#allocation4]  }
 0xa9e   :  { %1240 = dma.done.wait [#allocation4], 32  }
 0xa9f   :  { %1241 = vsyncadd [#allocation4], 4294967264 }
 0xaa0   :  { %887 = vsyncpa [#allocation3], 1 }
 0xaa1   :  { %888 = vsyncpa [#allocation6], 1 }
 0xaa2   :  { %889 = vsyncpa [#allocation9], 1 }
 0xaa3   :  { %890 = vsyncpa [#allocation12], 1 }
 0xaa4   :  { %891 = vsyncpa [#allocation15], 1 }
 0xaa5   :  { %892 = vsyncpa [#allocation18], 1 }
 0xaa6   :  { %893 = vsyncpa [#allocation4], 1 }

</bundles_post_ra>
